<compile_context>
chip_gen: v7x
topology: tpu7x:2x2x1
jax: 0.10.0
libtpu: 0.0.40
codegen_flags: <defaults>
</compile_context>

<pallas_src>
import functools

import jax
import jax.numpy as jnp
from jax.experimental import pallas as pl
from jax.experimental.pallas import tpu as pltpu

EMB = 128        # embedding_size
HID = 64         # fc hidden width
OUT = 2          # output classes
OUT_PAD = 8      # narrow padded output width (block last dim == full array dim)


def _round_up(x, m):
    return (x + m - 1) // m * m


def _cdiv(a, b):
    return (a + b - 1) // b


def discriminator_kernel(va_ref, vb_ref, w1a_ref, w1b_ref, b1_ref,
                         w2_ref, b2_ref, o_ref):
    # f32 tiles straight from HBM; cast to bf16 immediately before the MXU
    # pushes (no separate XLA convert op touching HBM).
    va = va_ref[...].astype(jnp.bfloat16)
    vb = vb_ref[...].astype(jnp.bfloat16)

    # Hidden layer: relu(cat(Va,Vb) @ W1^T + b1) == relu(Va@W1a + Vb@W1b + b1)
    h = jnp.dot(va, w1a_ref[...], preferred_element_type=jnp.float32)
    h = h + jnp.dot(vb, w1b_ref[...], preferred_element_type=jnp.float32)
    h = jnp.maximum(h + b1_ref[...], 0.0)                      # bias + relu in f32

    # Output layer on an 8-lane padded weight; narrow f32 writeback.
    out = jnp.dot(h.astype(jnp.bfloat16), w2_ref[...],
                  preferred_element_type=jnp.float32)           # (TB, OUT_PAD)
    o_ref[...] = (out + b2_ref[...]).astype(o_ref.dtype)


def prepare_params(params):
    """One-time weight prep: transpose, split along the concat axis, pad, cast.

    Hoisted out of the forward path so per-call launch overhead stays minimal.
    """
    w1t = params["w1"].T.astype(jnp.bfloat16)         # (2*EMB, HID)
    w1a = w1t[:EMB, :]                                # multiplies Va
    w1b = w1t[EMB:, :]                                # multiplies Vb
    b1 = params["b1"].reshape(1, HID).astype(jnp.float32)
    w2p = jnp.zeros((HID, OUT_PAD), jnp.bfloat16).at[:, :OUT].set(
        params["w2"].T.astype(jnp.bfloat16))
    b2p = jnp.zeros((1, OUT_PAD), jnp.float32).at[:, :OUT].set(
        params["b2"].astype(jnp.float32))
    return {"w1a": w1a, "w1b": w1b, "b1": b1, "w2p": w2p, "b2p": b2p}


@functools.partial(jax.jit, static_argnames=("tb",))
def discriminator_forward(Va, Vb, prepped, *, tb=4096):
    """Va, Vb: (B, 128) float32.  prepped: prepare_params(...).  Returns (B, 2) f32."""
    B = Va.shape[0]
    B8 = _round_up(B, 8)

    # Batch tile: multiple of 8 sublanes, clamped to the padded batch; for
    # mid/large batches ensure >= 2 grid steps so v7x's two TCs both get work.
    TB = min(tb, B8)
    if B8 >= 1024:
        TB = min(TB, _round_up(_cdiv(B8, 2), 8))
    Bp = _round_up(B, TB)
    if Bp != B:  # zero-pad ragged batch; padded rows are sliced off below.
        Va = jnp.pad(Va, ((0, Bp - B), (0, 0)))
        Vb = jnp.pad(Vb, ((0, Bp - B), (0, 0)))
    Va = Va.astype(jnp.float32)
    Vb = Vb.astype(jnp.float32)

    grid = (Bp // TB,)
    flops = 2 * Bp * (2 * EMB * HID + HID * OUT_PAD)
    bytes_accessed = (2 * Bp * EMB * 4                          # f32 inputs
                      + (2 * EMB * HID + HID * OUT_PAD) * 2     # bf16 weights
                      + (HID + OUT_PAD) * 4                     # f32 biases
                      + Bp * OUT_PAD * 4)                       # narrow f32 output

    out = pl.pallas_call(
        discriminator_kernel,
        out_shape=jax.ShapeDtypeStruct((Bp, OUT_PAD), jnp.float32),
        grid=grid,
        in_specs=[
            pl.BlockSpec((TB, EMB), lambda i: (i, 0)),          # Va batch tile (f32)
            pl.BlockSpec((TB, EMB), lambda i: (i, 0)),          # Vb batch tile (f32)
            pl.BlockSpec((EMB, HID), lambda i: (0, 0)),         # W1a (resident)
            pl.BlockSpec((EMB, HID), lambda i: (0, 0)),         # W1b (resident)
            pl.BlockSpec((1, HID), lambda i: (0, 0)),           # b1  (resident)
            pl.BlockSpec((HID, OUT_PAD), lambda i: (0, 0)),     # W2 padded (resident)
            pl.BlockSpec((1, OUT_PAD), lambda i: (0, 0)),       # b2 padded (resident)
        ],
        out_specs=pl.BlockSpec((TB, OUT_PAD), lambda i: (i, 0)),
        compiler_params=pltpu.CompilerParams(
            dimension_semantics=("parallel",)),                 # v7x: 2 TCs split batch
        cost_estimate=pl.CostEstimate(
            flops=flops, transcendentals=0, bytes_accessed=bytes_accessed),
    )(Va, Vb, prepped["w1a"], prepped["w1b"], prepped["b1"],
      prepped["w2p"], prepped["b2p"])

    return out[:B, :OUT]


def init_params(key):
    """Deterministic synthetic parameters matching nn.Linear shapes."""
    k1, k2, k3, k4 = jax.random.split(key, 4)
    # nn.Linear(256, 64): weight (64, 256), bias (64,)
    bound1 = 1.0 / jnp.sqrt(2.0 * EMB)
    w1 = jax.random.uniform(k1, (HID, 2 * EMB), jnp.float32, -bound1, bound1)
    b1 = jax.random.uniform(k2, (HID,), jnp.float32, -bound1, bound1)
    # nn.Linear(64, 2): weight (2, 64), bias (2,)
    bound2 = 1.0 / jnp.sqrt(float(HID))
    w2 = jax.random.uniform(k3, (OUT, HID), jnp.float32, -bound2, bound2)
    b2 = jax.random.uniform(k4, (OUT,), jnp.float32, -bound2, bound2)
    return {"w1": w1, "b1": b1, "w2": w2, "b2": b2}


def reference_forward(Va, Vb, params):
    V = jnp.concatenate([Va, Vb], axis=1)
    V = jnp.maximum(V @ params["w1"].T + params["b1"], 0.0)
    return V @ params["w2"].T + params["b2"]


if __name__ == "__main__":
    key = jax.random.PRNGKey(0)
    kp, ka, kb = jax.random.split(key, 3)
    params = init_params(kp)
    prepped = prepare_params(params)

    # Small demo batch (single-block path).
    B = 8
    Va = jax.random.normal(ka, (B, EMB), jnp.float32)
    Vb = jax.random.normal(kb, (B, EMB), jnp.float32)
    out = jax.block_until_ready(discriminator_forward(Va, Vb, prepped, tb=4096))
    ref = reference_forward(Va, Vb, params)
    assert out.shape == (B, OUT), out.shape
    # bf16 MXU operands -> loosen tolerance vs. the f32 reference.
    assert jnp.allclose(out, ref, atol=3e-2, rtol=3e-2), (
        "mismatch vs reference", float(jnp.max(jnp.abs(out - ref))))

    # Exercise the multi-block grid + ragged-batch padding path.
    B2 = 520
    Va2 = jax.random.normal(ka, (B2, EMB), jnp.float32)
    Vb2 = jax.random.normal(kb, (B2, EMB), jnp.float32)
    out2 = jax.block_until_ready(discriminator_forward(Va2, Vb2, prepped, tb=256))
    ref2 = reference_forward(Va2, Vb2, params)
    assert out2.shape == (B2, OUT), out2.shape
    assert jnp.allclose(out2, ref2, atol=3e-2, rtol=3e-2), (
        "mismatch vs reference (gridded)", float(jnp.max(jnp.abs(out2 - ref2))))

    print("KERNEL_OK")
</pallas_src>

<mosaic_0001>
module attributes {stable_mosaic.version = 11 : i64} {
  func.func @discriminator_kernel(%arg0: i32, %arg1: memref<8x128xf32, #tpu.memory_space<vmem>>, %arg2: memref<8x128xf32, #tpu.memory_space<vmem>>, %arg3: memref<128x64xbf16, #tpu.memory_space<vmem>>, %arg4: memref<128x64xbf16, #tpu.memory_space<vmem>>, %arg5: memref<1x64xf32, #tpu.memory_space<vmem>>, %arg6: memref<64x8xbf16, #tpu.memory_space<vmem>>, %arg7: memref<1x8xf32, #tpu.memory_space<vmem>>, %arg8: memref<8x8xf32, #tpu.memory_space<vmem>>) attributes {dimension_semantics = [#tpu.dimension_semantics<parallel>], iteration_bounds = array<i64: 1>, scalar_prefetch = 0 : i64, scratch_operands = 0 : i64, tpu.core_type = #tpu.core_type<tc>, window_params = [{transform_indices = @transform_0, window_bounds = array<i64: 8, 128>}, {transform_indices = @transform_1, window_bounds = array<i64: 8, 128>}, {pipeline_mode = #tpu.pipeline_mode<synchronous>, transform_indices = @transform_2, window_bounds = array<i64: 128, 64>}, {pipeline_mode = #tpu.pipeline_mode<synchronous>, transform_indices = @transform_3, window_bounds = array<i64: 128, 64>}, {pipeline_mode = #tpu.pipeline_mode<synchronous>, transform_indices = @transform_4, window_bounds = array<i64: 1, 64>}, {pipeline_mode = #tpu.pipeline_mode<synchronous>, transform_indices = @transform_5, window_bounds = array<i64: 64, 8>}, {pipeline_mode = #tpu.pipeline_mode<synchronous>, transform_indices = @transform_6, window_bounds = array<i64: 1, 8>}, {transform_indices = @transform_7, window_bounds = array<i64: 8, 8>}]} {
    %c0 = arith.constant 0 : index
    %c0_0 = arith.constant 0 : index
    %0 = vector.load %arg1[%c0, %c0_0] : memref<8x128xf32, #tpu.memory_space<vmem>>, vector<8x128xf32>
    %1 = arith.truncf %0 : vector<8x128xf32> to vector<8x128xbf16>
    %c0_1 = arith.constant 0 : index
    %c0_2 = arith.constant 0 : index
    %2 = vector.load %arg2[%c0_1, %c0_2] : memref<8x128xf32, #tpu.memory_space<vmem>>, vector<8x128xf32>
    %3 = arith.truncf %2 : vector<8x128xf32> to vector<8x128xbf16>
    %c0_3 = arith.constant 0 : index
    %c0_4 = arith.constant 0 : index
    %4 = vector.load %arg3[%c0_3, %c0_4] : memref<128x64xbf16, #tpu.memory_space<vmem>>, vector<128x64xbf16>
    %cst = arith.constant dense<0.000000e+00> : vector<8x64xf32>
    %5 = tpu.matmul %1, %4, %cst {dimension_numbers = #tpu.dot_dimension_numbers<[1], [0], [0], [1], [0, 0, 1, 1], [], []>} : vector<8x128xbf16>, vector<128x64xbf16>, vector<8x64xf32> -> vector<8x64xf32>
    %c0_5 = arith.constant 0 : index
    %c0_6 = arith.constant 0 : index
    %6 = vector.load %arg4[%c0_5, %c0_6] : memref<128x64xbf16, #tpu.memory_space<vmem>>, vector<128x64xbf16>
    %cst_7 = arith.constant dense<0.000000e+00> : vector<8x64xf32>
    %7 = tpu.matmul %3, %6, %cst_7 {dimension_numbers = #tpu.dot_dimension_numbers<[1], [0], [0], [1], [0, 0, 1, 1], [], []>} : vector<8x128xbf16>, vector<128x64xbf16>, vector<8x64xf32> -> vector<8x64xf32>
    %8 = arith.addf %5, %7 : vector<8x64xf32>
    %c0_8 = arith.constant 0 : index
    %c0_9 = arith.constant 0 : index
    %9 = vector.load %arg5[%c0_8, %c0_9] : memref<1x64xf32, #tpu.memory_space<vmem>>, vector<1x64xf32>
    %10 = vector.broadcast %9 : vector<1x64xf32> to vector<8x64xf32>
    %11 = arith.addf %8, %10 : vector<8x64xf32>
    %cst_10 = arith.constant 0.000000e+00 : f32
    %12 = vector.broadcast %cst_10 : f32 to vector<8x64xf32>
    %13 = arith.maximumf %11, %12 : vector<8x64xf32>
    %14 = arith.truncf %13 : vector<8x64xf32> to vector<8x64xbf16>
    %c0_11 = arith.constant 0 : index
    %c0_12 = arith.constant 0 : index
    %15 = vector.load %arg6[%c0_11, %c0_12] : memref<64x8xbf16, #tpu.memory_space<vmem>>, vector<64x8xbf16>
    %cst_13 = arith.constant dense<0.000000e+00> : vector<8x8xf32>
    %16 = tpu.matmul %14, %15, %cst_13 {dimension_numbers = #tpu.dot_dimension_numbers<[1], [0], [0], [1], [0, 0, 1, 1], [], []>} : vector<8x64xbf16>, vector<64x8xbf16>, vector<8x8xf32> -> vector<8x8xf32>
    %c0_14 = arith.constant 0 : index
    %c0_15 = arith.constant 0 : index
    %17 = vector.load %arg7[%c0_14, %c0_15] : memref<1x8xf32, #tpu.memory_space<vmem>>, vector<1x8xf32>
    %18 = vector.broadcast %17 : vector<1x8xf32> to vector<8x8xf32>
    %19 = arith.addf %16, %18 : vector<8x8xf32>
    %c0_16 = arith.constant 0 : index
    %c0_17 = arith.constant 0 : index
    %20 = vector.load %arg8[%c0_16, %c0_17] : memref<8x8xf32, #tpu.memory_space<vmem>>, vector<8x8xf32>
    tpu.vector_store %arg8[%c0_16, %c0_17], %19 {strides = array<i32>} : memref<8x8xf32, #tpu.memory_space<vmem>>, vector<8x8xf32>,
    return
  }
  func.func @transform_0(%arg0: i32) -> (i32, i32) {
    %c0_i32 = arith.constant 0 : i32
    %c0_i32_0 = arith.constant 0 : i32
    return %arg0, %c0_i32 : i32, i32
  }
  func.func @transform_1(%arg0: i32) -> (i32, i32) {
    %c0_i32 = arith.constant 0 : i32
    %c0_i32_0 = arith.constant 0 : i32
    return %arg0, %c0_i32 : i32, i32
  }
  func.func @transform_2(%arg0: i32) -> (i32, i32) {
    %c0_i32 = arith.constant 0 : i32
    %c0_i32_0 = arith.constant 0 : i32
    %c0_i32_1 = arith.constant 0 : i32
    return %c0_i32, %c0_i32_0 : i32, i32
  }
  func.func @transform_3(%arg0: i32) -> (i32, i32) {
    %c0_i32 = arith.constant 0 : i32
    %c0_i32_0 = arith.constant 0 : i32
    %c0_i32_1 = arith.constant 0 : i32
    return %c0_i32, %c0_i32_0 : i32, i32
  }
  func.func @transform_4(%arg0: i32) -> (i32, i32) {
    %c0_i32 = arith.constant 0 : i32
    %c0_i32_0 = arith.constant 0 : i32
    %c0_i32_1 = arith.constant 0 : i32
    return %c0_i32, %c0_i32_0 : i32, i32
  }
  func.func @transform_5(%arg0: i32) -> (i32, i32) {
    %c0_i32 = arith.constant 0 : i32
    %c0_i32_0 = arith.constant 0 : i32
    %c0_i32_1 = arith.constant 0 : i32
    return %c0_i32, %c0_i32_0 : i32, i32
  }
  func.func @transform_6(%arg0: i32) -> (i32, i32) {
    %c0_i32 = arith.constant 0 : i32
    %c0_i32_0 = arith.constant 0 : i32
    %c0_i32_1 = arith.constant 0 : i32
    return %c0_i32, %c0_i32_0 : i32, i32
  }
  func.func @transform_7(%arg0: i32) -> (i32, i32) {
    %c0_i32 = arith.constant 0 : i32
    %c0_i32_0 = arith.constant 0 : i32
    return %arg0, %c0_i32 : i32, i32
  }
}

</mosaic_0001>

<bundles_post_ra>
// kernel: discriminator_forward.1
= control target key start
LH: loop header
LB: loop body
LE: loop exit
PB: predicated region body
PF: predicated region fallthrough
CT: control target
= control target key end

     0   :  { %v458_v0 = vmov 0.0   ;;  %vm459_vm0 = vmmov 0   ;;  %vm288_vm1 = vcmask 523264   ;;  %vm332_vm2 = vcmask 64512   ;;  %s601_s3 = inlined_call_operand.vmem [shape: bf16[128,64], index: 3, kind: input, shape index: {}]   ;;  %s602_s2 = inlined_call_operand.vmem [shape: bf16[128,64], index: 2, kind: input, shape index: {}]   ;;  %s603_s5 = inlined_call_operand.vmem [shape: bf16[64,8], index: 5, kind: input, shape index: {}]   ;;  %s604_s1 = inlined_call_operand.vmem [shape: f32[8,128], index: 1, kind: input, shape index: {}]   ;;  %s605_s0 = inlined_call_operand.vmem [shape: f32[8,128], index: 0, kind: input, shape index: {}]   ;;  %s606_s4 = inlined_call_operand.vmem [shape: f32[1,64], index: 4, kind: input, shape index: {}]   ;;  %s607_s6 = inlined_call_operand.vmem [shape: f32[1,8], index: 6, kind: input, shape index: {}]   ;;  %s608_s7 = inlined_call_operand.vmem [shape: f32[8,8], index: 7, kind: output, shape index: {}]  }
   0x1   :  { %384 = vmatprep.subr.bf16.mxu0 %v458_v0  ;;  %404 = vmatprep.subr.bf16.mxu1 %v458_v0  ;;  %v438_v1 = vld [vmem:[%s601_s3] sm:$0xff]   ;;  %v440_v3 = vld [vmem:[%s601_s3 + $0x8] sm:$0xff]   ;;  %v442_v5 = vld [vmem:[%s601_s3 + $0x10] sm:$0xff]  }
   0x2   :  { %v439_v2 = vld [vmem:[%s602_s2] sm:$0xff]   ;;  %400 = vmatprep.mubr.msk.bf16.mxu0 %vm459_vm0, %v458_v0  ;;  %420 = vmatprep.mubr.msk.bf16.mxu1 %vm459_vm0, %v458_v0  ;;  %v441_v4 = vld [vmem:[%s602_s2 + $0x8] sm:$0xff]   ;;  %v443_v6 = vld [vmem:[%s602_s2 + $0x10] sm:$0xff]  }
   0x3   :  { %385 = vmatpush3.bf16.msra.mxu0 %v438_v1  ;;  %405 = vmatpush3.bf16.msra.mxu1 %v439_v2  ;;  %v444_v7 = vld [vmem:[%s601_s3 + $0x18] sm:$0xff]   ;;  %v446_v9 = vld [vmem:[%s601_s3 + $0x20] sm:$0xff]   ;;  %v448_v11 = vld [vmem:[%s601_s3 + $0x28] sm:$0xff]  }
   0x4   :  { %386 = vmatprep.subr.bf16.mxu0 %v458_v0  ;;  %406 = vmatprep.subr.bf16.mxu1 %v458_v0  ;;  %v445_v8 = vld [vmem:[%s602_s2 + $0x18] sm:$0xff]   ;;  %v447_v10 = vld [vmem:[%s602_s2 + $0x20] sm:$0xff]   ;;  %v449_v12 = vld [vmem:[%s602_s2 + $0x28] sm:$0xff]  }
   0x5   :  { %v450_v13 = vld [vmem:[%s601_s3 + $0x30] sm:$0xff]   ;;  %v452_v15 = vld [vmem:[%s601_s3 + $0x38] sm:$0xff]   ;;  %v29_v16 = vld [vmem:[%s604_s1] sm:$0xff] }
   0x6   :  { %v451_v14 = vld [vmem:[%s602_s2 + $0x30] sm:$0xff]   ;;  %v453_v17 = vld [vmem:[%s602_s2 + $0x38] sm:$0xff]   ;;  %v27_v18 = vld [vmem:[%s605_s0] sm:$0xff]  ;;  %v30_v19 = vpack.c.bf16 %v29_v16, %v29_v16 }
   0x7   :  { %387 = vmatpush3.bf16.msra.mxu0 %v440_v3  ;;  %407 = vmatpush3.bf16.msra.mxu1 %v441_v4  ;;  %v28_v20 = vpack.c.bf16 %v27_v18, %v27_v18  ;;  %v454_v21 = vld [vmem:[%s603_s5] sm:$0xff]   ;;  %v455_v22 = vld [vmem:[%s603_s5 + $0x8] sm:$0xff]   ;;  %v456_v23 = vld [vmem:[%s603_s5 + $0x10] sm:$0xff]  }
   0x8   :  { %388 = vmatprep.subr.bf16.mxu0 %v458_v0  ;;  %408 = vmatprep.subr.bf16.mxu1 %v458_v0  ;;  %v457_v24 = vld [vmem:[%s603_s5 + $0x18] sm:$0xff]   ;;  %v354_v27 = vld [vmem:[%s606_s4] ss:$0 sm:$0xff] }
   0x9   :  { %v355_v38 = vld [vmem:[%s607_s6] ss:$0 sm:$0xff] }
   0xb   :  { %389 = vmatpush3.bf16.msra.mxu0 %v442_v5  ;;  %409 = vmatpush3.bf16.msra.mxu1 %v443_v6 }
   0xc   :  { %390 = vmatprep.subr.bf16.mxu0 %v458_v0  ;;  %410 = vmatprep.subr.bf16.mxu1 %v458_v0 }
   0xf   :  { %391 = vmatpush3.bf16.msra.mxu0 %v444_v7  ;;  %411 = vmatpush3.bf16.msra.mxu1 %v445_v8 }
  0x10   :  { %392 = vmatprep.subr.bf16.mxu0 %v458_v0  ;;  %412 = vmatprep.subr.bf16.mxu1 %v458_v0 }
  0x13   :  { %393 = vmatpush3.bf16.msra.mxu0 %v446_v9  ;;  %413 = vmatpush3.bf16.msra.mxu1 %v447_v10 }
  0x14   :  { %394 = vmatprep.subr.bf16.mxu0 %v458_v0  ;;  %414 = vmatprep.subr.bf16.mxu1 %v458_v0 }
  0x17   :  { %395 = vmatpush3.bf16.msra.mxu0 %v448_v11  ;;  %415 = vmatpush3.bf16.msra.mxu1 %v449_v12 }
  0x18   :  { %396 = vmatprep.subr.bf16.mxu0 %v458_v0  ;;  %416 = vmatprep.subr.bf16.mxu1 %v458_v0 }
  0x1b   :  { %397 = vmatpush3.bf16.msra.mxu0 %v450_v13  ;;  %417 = vmatpush3.bf16.msra.mxu1 %v451_v14 }
  0x1c   :  { %398 = vmatprep.subr.bf16.mxu0 %v458_v0  ;;  %418 = vmatprep.subr.bf16.mxu1 %v458_v0 }
  0x1f   :  { %399 = vmatpush3.bf16.msra.mxu0 %v452_v15  ;;  %419 = vmatpush3.bf16.msra.mxu1 %v453_v17 }
  0x20   :  { %424 = vmatprep.subr.bf16.mxu0 %v458_v0 }
  0x22   :  { %401 = vmatmul.mubr.bf16.vlgmr.msra.gmra.mrb[0].mxu0 %v30_v19  ;;  %421 = vmatmul.mubr.bf16.vlgmr.msra.gmra.mrb[0].mxu1 %v28_v20 }
  0x23   :  { %425 = vmatpush3.bf16.msra.mxu0 %v454_v21  ;;  %432 = vmatprep.mubr.msk.bf16.mxu0 %vm459_vm0, %v458_v0 }
  0x24   :  { %426 = vmatprep.subr.bf16.mxu0 %v458_v0 }
  0x27   :  { %427 = vmatpush3.bf16.msra.mxu0 %v455_v22 }
  0x28   :  { %428 = vmatprep.subr.bf16.mxu0 %v458_v0 }
  0x2b   :  { %429 = vmatpush3.bf16.msra.mxu0 %v456_v23 }
  0x2c   :  { %430 = vmatprep.subr.bf16.mxu0 %v458_v0 }
  0x2f   :  { %431 = vmatpush3.bf16.msra.mxu0 %v457_v24 }
  0xf5   :  { %v145_v25 = vpop.f32.mrb[0].mxu0  ;;  %v233_v26 = vpop.f32.mrb[0].mxu1 }
  0xf6   :  { %v402_v28 = vpop.f32.mrb[1].mxu0  ;;  %v234_v29 = vadd.f32 %v233_v26, %v145_v25  ;;  %v422_v30 = vpop.f32.mrb[1].mxu1 }
  0xf7   :  { %v148_v31 = vpop.f32.mrb[2].mxu0  ;;  %v236_v32 = vpop.f32.mrb[2].mxu1 }
  0xf8   :  { %v403_v33 = vpop.f32.mrb[3].mxu0  ;;  %v246_v34 = vadd.f32 %v354_v27, %v234_v29  ;;  %v423_v35 = vpop.f32.mrb[3].mxu1 }
  0xfa   :  { %v247_v36 = vmax.f32 %v246_v34, 0.0 }
  0xfc   :  { %v248_v37 = vpack.c.bf16 %v247_v36, %v247_v36 }
  0xfe   :  { %433 = vmatmul.mubr.msk.bf16.vlgmr.msra.gmra.mrb[4].mxu0 %vm288_vm1, %v248_v37 }
 0x1d1   :  { %v326_v39 = vpop.f32.mrb[4].mxu0 }
 0x1d2   :  { %v327_v40 = vadd.f32 %v355_v38, %v326_v39  ;;  %v434_v41 = vpop.f32.mrb[5].mxu0 }
 0x1d3   :  { %v329_v42 = vpop.f32.mrb[6].mxu0 }
 0x1d4   :  { %333 = vst.msk [vmem:[%s608_s7] sm:$0xff] %vm332_vm2, %v327_v40  ;;  %v435_v43 = vpop.f32.mrb[7].mxu0 }

</bundles_post_ra>
